<compile_context>
chip_gen: v5e
topology: v5e:2x2
jax: 0.10.0
libtpu: 0.0.40
codegen_flags: <defaults>
</compile_context>

<pallas_src>
import functools

import jax
import jax.numpy as jnp
import numpy as np
from jax.experimental import pallas as pl
from jax.experimental.pallas import tpu as pltpu

LANE = 128


def _round_up(v, m):
    return (v + m - 1) // m * m


# ----------------------------------------------------------------------------
# Fused forward kernel
# ----------------------------------------------------------------------------
def _fused_forward_kernel(
    num_layers,
    xpair_ref,    # (2, N, C)    f32   [x ; x0] raw node features
    wio_ref,      # (2, C, H)    bf16  [w_in ; w_in @ w_skip]
    wgat_ref,     # (L, H, H)    bf16  per-layer GATConv linear weights
    att_ref,      # (L, 3, 1, H) f32   per-layer [att_src ; att_dst ; bias]
    attbias_ref,  # (N, N)       f32   additive attention mask (0 edge/self-loop, -1e30 else)
    gadjn_ref,    # (N, N)       f32   inv_deg-row-scaled original-edge adjacency
    rds_ref,      # (N, 1)       f32   rowdeg * inv_deg
    wfc_ref,      # (H, Op)      bf16  final fc weight (Op lane-padded to 128)
    bfc_ref,      # (1, Op)      f32   final fc bias
    o_ref,        # (N, Op)      f32
):
    bf16 = jnp.bfloat16
    f32 = jnp.float32

    # --- prologue ---
    # x      = input_fc(x_raw)
    # x_skip = skip_fc(input_fc(x0_raw))  -- folded into a single matmul (w_in @ w_skip)
    x = jnp.dot(xpair_ref[0].astype(bf16), wio_ref[0], preferred_element_type=f32)
    x_skip = jnp.dot(xpair_ref[1].astype(bf16), wio_ref[1], preferred_element_type=f32)

    att_bias = attbias_ref[...]
    gadj_n = gadjn_ref[...]            # f32 (used for the tiny gs matvec)
    gadj_n_bf = gadj_n.astype(bf16)    # bf16 (used for the gx matmul)
    rd_scaled = rds_ref[...]

    # Layer loop: num_layers is a small compile-time constant -> static unroll.
    for layer in range(num_layers):
        w = wgat_ref[layer]            # (H, H) bf16
        a_src = att_ref[layer, 0]      # (1, H) f32
        a_dst_v = att_ref[layer, 1]    # (1, H) f32
        bias = att_ref[layer, 2]       # (1, H) f32

        # --- GATConv (heads=1): linear transform ---
        h = jnp.dot(x.astype(bf16), w, preferred_element_type=f32)      # (N, H) f32
        h_bf = h.astype(bf16)

        # dst attention scalar as a column: VPU multiply + lane reduce (f32).
        a_dst = jnp.sum(h * a_dst_v, axis=-1, keepdims=True)            # (N, 1)
        # src attention scalar as a row: one tiny M=1 matmul (bf16 operands, f32 acc).
        a_src_row = jnp.einsum("oh,nh->on", a_src.astype(bf16), h_bf,
                               preferred_element_type=f32)              # (1, N)

        # e[i, j] = LeakyReLU(a_dst[i] + a_src[j], 0.2); additive -1e30 bias masks
        # non-edges (self loops guaranteed by densify_graph, so softmax rows are finite).
        e = a_dst + a_src_row                                            # (N, N) f32
        e = jnp.where(e >= 0.0, e, 0.2 * e)
        logits = e + att_bias
        m = jnp.max(logits, axis=-1, keepdims=True)
        p = jnp.exp(logits - m)
        # approx reciprocal (EUP slot) is fine for inference; rows sum to 1 +- ~2^-12.
        alpha = p * pl.reciprocal(jnp.sum(p, axis=-1, keepdims=True), approx=True)

        agg = jnp.dot(alpha.astype(bf16), h_bf, preferred_element_type=f32) + bias
        x_agg = jnp.maximum(agg, 0.0)                                    # relu(conv(x))

        # --- Gamma (local neighbor diffs, p=2); smooth == squash by construction ---
        # sum_j gadjn[i,j] * ||xa_i - xa_j||^2
        #   = sq_i * rd_scaled_i + (gadjn @ sq)_i - 2 * <xa_i, (gadjn @ xa)_i>
        sq = jnp.sum(x_agg * x_agg, axis=-1, keepdims=True)              # (N, 1) f32
        gx = jnp.dot(gadj_n_bf, x_agg.astype(bf16),
                     preferred_element_type=f32)                         # (N, H) f32
        gs = jnp.dot(gadj_n, sq, preferred_element_type=f32)             # (N, 1) matvec
        cross = jnp.sum(x_agg * gx, axis=-1, keepdims=True)              # (N, 1)
        gamma_arg = sq * rd_scaled + gs - 2.0 * cross
        gamma = jnp.tanh(jnp.maximum(gamma_arg, 0.0))                    # (N, 1) f32

        # A, B, C with Gamma_smooth == Gamma_squash == gamma
        inv = pl.reciprocal(1.0 + 2.0 * gamma, approx=True)
        coef = gamma * inv
        x = inv * x + coef * x_agg + coef * x_skip

    # final fc — single lane-dense (N, 128) f32 store
    o_ref[...] = (
        jnp.dot(x.astype(bf16), wfc_ref[...], preferred_element_type=f32) + bfc_ref[...]
    )


# ----------------------------------------------------------------------------
# Wrapper: one pallas_call for the whole forward
# ----------------------------------------------------------------------------
def dual_gate_gat_forward(params, x_in, x0_in, att_bias, gadj_norm, rd_scaled,
                          *, num_layers, out_channels):
    n, c = x_in.shape
    h = params["w_gat"].shape[-1]
    op = params["w_fc"].shape[-1]
    L = num_layers

    x_pair = jnp.stack([x_in, x0_in])      # (2, N, C) — one descriptor for both inputs

    def full(shape):
        return pl.BlockSpec(shape, lambda i: (0,) * len(shape))

    out = pl.pallas_call(
        functools.partial(_fused_forward_kernel, num_layers),
        out_shape=jax.ShapeDtypeStruct((n, op), jnp.float32),
        grid=(1,),
        in_specs=[
            full((2, n, c)),       # x / x0
            full((2, c, h)),       # w_in / w_in@w_skip      (bf16)
            full((L, h, h)),       # stacked GAT weights     (bf16)
            full((L, 3, 1, h)),    # stacked att_src/att_dst/bias
            full((n, n)),          # additive attention mask
            full((n, n)),          # row-normalized gamma adjacency
            full((n, 1)),          # rowdeg * inv_deg
            full((h, op)),         # w_fc                    (bf16)
            full((1, op)),         # b_fc
        ],
        out_specs=full((n, op)),
        compiler_params=pltpu.CompilerParams(dimension_semantics=("arbitrary",)),
    )(
        x_pair, params["w_io"], params["w_gat"], params["att_all"],
        att_bias, gadj_norm, rd_scaled, params["w_fc"], params["b_fc"],
    )
    return out[:, :out_channels]


# ----------------------------------------------------------------------------
# Parameter init (bf16 weights, folded skip path) and graph densification
# ----------------------------------------------------------------------------
def init_params(key, in_channels, hidden, out_channels, num_layers, lane=LANE):
    op = _round_up(out_channels, lane)        # only the fc output dim is lane-padded
    ks = jax.random.split(key, 4 + 4 * num_layers)
    s = 0.1

    w_in = s * jax.random.normal(ks[0], (in_channels, hidden), jnp.float32)
    w_skip = s * jax.random.normal(ks[1], (hidden, hidden), jnp.float32)
    w_skip_comb = w_in @ w_skip               # exact fold: skip_fc(input_fc(x0))

    w_fc = s * jax.random.normal(ks[2], (hidden, out_channels), jnp.float32)
    b_fc = s * jax.random.normal(ks[3], (1, out_channels), jnp.float32)
    w_fc = jnp.pad(w_fc, ((0, 0), (0, op - out_channels)))
    b_fc = jnp.pad(b_fc, ((0, 0), (0, op - out_channels)))

    w_gat, att_all = [], []
    for l in range(num_layers):
        k0, k1, k2, k3 = ks[4 + 4 * l: 8 + 4 * l]
        w_gat.append(s * jax.random.normal(k0, (hidden, hidden), jnp.float32))
        a_src = s * jax.random.normal(k1, (1, hidden), jnp.float32)
        a_dst = s * jax.random.normal(k2, (1, hidden), jnp.float32)
        bias = s * jax.random.normal(k3, (1, hidden), jnp.float32)
        att_all.append(jnp.stack([a_src, a_dst, bias]))   # (3, 1, H)

    return {
        "w_io": jnp.stack([w_in, w_skip_comb]).astype(jnp.bfloat16),   # (2, C, H)
        "w_gat": jnp.stack(w_gat).astype(jnp.bfloat16),                # (L, H, H)
        "att_all": jnp.stack(att_all),                                 # (L, 3, 1, H) f32
        "w_fc": w_fc.astype(jnp.bfloat16),                             # (H, Op)
        "b_fc": b_fc,                                                  # (1, Op) f32
    }


def densify_graph(edge_index, num_nodes):
    """edge_index = [2, E] (row = source, col = target).  No duplicate edges assumed."""
    row, col = np.asarray(edge_index)
    att_bias = np.full((num_nodes, num_nodes), -1e30, np.float32)
    att_bias[col, row] = 0.0                   # message j -> i lands at target i
    np.fill_diagonal(att_bias, 0.0)            # GATConv add_self_loops=True
    gamma_adj = np.zeros((num_nodes, num_nodes), np.float32)
    gamma_adj[row, col] = 1.0                  # gamma scatter-adds onto `row`
    deg = np.bincount(row, minlength=num_nodes).astype(np.float32)
    inv_deg = 1.0 / (deg + 1e-10)
    gadj_norm = (gamma_adj * inv_deg[:, None]).astype(np.float32)
    rowdeg = gamma_adj.sum(axis=1)
    rd_scaled = (rowdeg * inv_deg).reshape(num_nodes, 1).astype(np.float32)
    return jnp.asarray(att_bias), jnp.asarray(gadj_norm), jnp.asarray(rd_scaled)


# ----------------------------------------------------------------------------
# Main
# ----------------------------------------------------------------------------
if __name__ == "__main__":
    N = 16            # nodes
    IN_C = 8          # in_channels
    HID = 32          # hidden_channels (kept native — not padded to 128)
    OUT_C = 4         # out_channels
    NUM_LAYERS = 2

    # Deterministic graph: bidirectional ring + forward chords (no self loops / dups).
    edges = []
    for i in range(N):
        edges.append((i, (i + 1) % N))
        edges.append(((i + 1) % N, i))
        edges.append((i, (i + 3) % N))
    edge_index = np.array(edges, dtype=np.int32).T       # [2, E], row=source, col=target
    att_bias, gadj_norm, rd_scaled = densify_graph(edge_index, N)

    key = jax.random.PRNGKey(0)
    kx, kx0, kp = jax.random.split(key, 3)
    x_in = jax.random.normal(kx, (N, IN_C), jnp.float32)
    x0_in = jax.random.normal(kx0, (N, IN_C), jnp.float32)
    params = init_params(kp, IN_C, HID, OUT_C, NUM_LAYERS)

    fwd = jax.jit(functools.partial(dual_gate_gat_forward,
                                    num_layers=NUM_LAYERS, out_channels=OUT_C))
    out = jax.block_until_ready(fwd(params, x_in, x0_in, att_bias, gadj_norm, rd_scaled))
    assert out.shape == (N, OUT_C) and out.dtype == jnp.float32
    assert bool(jnp.all(jnp.isfinite(out)))
    print("KERNEL_OK")
</pallas_src>

<mosaic_0001>
module attributes {stable_mosaic.version = 11 : i64} {
  func.func @_fused_forward_kernel(%arg0: i32, %arg1: memref<2x16x8xf32, #tpu.memory_space<vmem>>, %arg2: memref<2x8x32xbf16, #tpu.memory_space<vmem>>, %arg3: memref<2x32x32xbf16, #tpu.memory_space<vmem>>, %arg4: memref<2x3x1x32xf32, #tpu.memory_space<vmem>>, %arg5: memref<16x16xf32, #tpu.memory_space<vmem>>, %arg6: memref<16x16xf32, #tpu.memory_space<vmem>>, %arg7: memref<16x1xf32, #tpu.memory_space<vmem>>, %arg8: memref<32x128xbf16, #tpu.memory_space<vmem>>, %arg9: memref<1x128xf32, #tpu.memory_space<vmem>>, %arg10: memref<16x128xf32, #tpu.memory_space<vmem>>) attributes {dimension_semantics = [#tpu.dimension_semantics<arbitrary>], iteration_bounds = array<i64: 1>, scalar_prefetch = 0 : i64, scratch_operands = 0 : i64, tpu.core_type = #tpu.core_type<tc>, window_params = [{pipeline_mode = #tpu.pipeline_mode<synchronous>, transform_indices = @transform_0, window_bounds = array<i64: 2, 16, 8>}, {pipeline_mode = #tpu.pipeline_mode<synchronous>, transform_indices = @transform_1, window_bounds = array<i64: 2, 8, 32>}, {pipeline_mode = #tpu.pipeline_mode<synchronous>, transform_indices = @transform_2, window_bounds = array<i64: 2, 32, 32>}, {pipeline_mode = #tpu.pipeline_mode<synchronous>, transform_indices = @transform_3, window_bounds = array<i64: 2, 3, 1, 32>}, {pipeline_mode = #tpu.pipeline_mode<synchronous>, transform_indices = @transform_4, window_bounds = array<i64: 16, 16>}, {pipeline_mode = #tpu.pipeline_mode<synchronous>, transform_indices = @transform_5, window_bounds = array<i64: 16, 16>}, {pipeline_mode = #tpu.pipeline_mode<synchronous>, transform_indices = @transform_6, window_bounds = array<i64: 16, 1>}, {pipeline_mode = #tpu.pipeline_mode<synchronous>, transform_indices = @transform_7, window_bounds = array<i64: 32, 128>}, {pipeline_mode = #tpu.pipeline_mode<synchronous>, transform_indices = @transform_8, window_bounds = array<i64: 1, 128>}, {pipeline_mode = #tpu.pipeline_mode<synchronous>, transform_indices = @transform_9, window_bounds = array<i64: 16, 128>}]} {
    %c0 = arith.constant 0 : index
    %c0_0 = arith.constant 0 : index
    %c0_1 = arith.constant 0 : index
    %0 = vector.load %arg1[%c0, %c0_0, %c0_1] : memref<2x16x8xf32, #tpu.memory_space<vmem>>, vector<1x16x8xf32>
    %1 = vector.shape_cast %0 : vector<1x16x8xf32> to vector<16x8xf32>
    %2 = arith.truncf %1 : vector<16x8xf32> to vector<16x8xbf16>
    %c0_2 = arith.constant 0 : index
    %c0_3 = arith.constant 0 : index
    %c0_4 = arith.constant 0 : index
    %3 = vector.load %arg2[%c0_2, %c0_3, %c0_4] : memref<2x8x32xbf16, #tpu.memory_space<vmem>>, vector<1x8x32xbf16>
    %4 = vector.shape_cast %3 : vector<1x8x32xbf16> to vector<8x32xbf16>
    %cst = arith.constant dense<0.000000e+00> : vector<16x32xf32>
    %5 = tpu.matmul %2, %4, %cst {dimension_numbers = #tpu.dot_dimension_numbers<[1], [0], [0], [1], [0, 0, 1, 1], [], []>} : vector<16x8xbf16>, vector<8x32xbf16>, vector<16x32xf32> -> vector<16x32xf32>
    %c1 = arith.constant 1 : index
    %c0_5 = arith.constant 0 : index
    %c0_6 = arith.constant 0 : index
    %6 = vector.load %arg1[%c1, %c0_5, %c0_6] : memref<2x16x8xf32, #tpu.memory_space<vmem>>, vector<1x16x8xf32>
    %7 = vector.shape_cast %6 : vector<1x16x8xf32> to vector<16x8xf32>
    %8 = arith.truncf %7 : vector<16x8xf32> to vector<16x8xbf16>
    %c1_7 = arith.constant 1 : index
    %c0_8 = arith.constant 0 : index
    %c0_9 = arith.constant 0 : index
    %9 = vector.load %arg2[%c1_7, %c0_8, %c0_9] : memref<2x8x32xbf16, #tpu.memory_space<vmem>>, vector<1x8x32xbf16>
    %10 = vector.shape_cast %9 : vector<1x8x32xbf16> to vector<8x32xbf16>
    %cst_10 = arith.constant dense<0.000000e+00> : vector<16x32xf32>
    %11 = tpu.matmul %8, %10, %cst_10 {dimension_numbers = #tpu.dot_dimension_numbers<[1], [0], [0], [1], [0, 0, 1, 1], [], []>} : vector<16x8xbf16>, vector<8x32xbf16>, vector<16x32xf32> -> vector<16x32xf32>
    %c0_11 = arith.constant 0 : index
    %c0_12 = arith.constant 0 : index
    %12 = vector.load %arg5[%c0_11, %c0_12] : memref<16x16xf32, #tpu.memory_space<vmem>>, vector<16x16xf32>
    %c0_13 = arith.constant 0 : index
    %c0_14 = arith.constant 0 : index
    %13 = vector.load %arg6[%c0_13, %c0_14] : memref<16x16xf32, #tpu.memory_space<vmem>>, vector<16x16xf32>
    %14 = arith.truncf %13 : vector<16x16xf32> to vector<16x16xbf16>
    %c0_15 = arith.constant 0 : index
    %c0_16 = arith.constant 0 : index
    %15 = vector.load %arg7[%c0_15, %c0_16] : memref<16x1xf32, #tpu.memory_space<vmem>>, vector<16x1xf32>
    %c0_17 = arith.constant 0 : index
    %c0_18 = arith.constant 0 : index
    %c0_19 = arith.constant 0 : index
    %16 = vector.load %arg3[%c0_17, %c0_18, %c0_19] : memref<2x32x32xbf16, #tpu.memory_space<vmem>>, vector<1x32x32xbf16>
    %17 = vector.shape_cast %16 : vector<1x32x32xbf16> to vector<32x32xbf16>
    %c0_20 = arith.constant 0 : index
    %c0_21 = arith.constant 0 : index
    %c0_22 = arith.constant 0 : index
    %c0_23 = arith.constant 0 : index
    %18 = vector.load %arg4[%c0_20, %c0_21, %c0_22, %c0_23] : memref<2x3x1x32xf32, #tpu.memory_space<vmem>>, vector<1x1x1x32xf32>
    %19 = vector.shape_cast %18 : vector<1x1x1x32xf32> to vector<1x32xf32>
    %c0_24 = arith.constant 0 : index
    %c1_25 = arith.constant 1 : index
    %c0_26 = arith.constant 0 : index
    %c0_27 = arith.constant 0 : index
    %20 = vector.load %arg4[%c0_24, %c1_25, %c0_26, %c0_27] : memref<2x3x1x32xf32, #tpu.memory_space<vmem>>, vector<1x1x1x32xf32>
    %21 = vector.shape_cast %20 : vector<1x1x1x32xf32> to vector<1x32xf32>
    %c0_28 = arith.constant 0 : index
    %c2 = arith.constant 2 : index
    %c0_29 = arith.constant 0 : index
    %c0_30 = arith.constant 0 : index
    %22 = vector.load %arg4[%c0_28, %c2, %c0_29, %c0_30] : memref<2x3x1x32xf32, #tpu.memory_space<vmem>>, vector<1x1x1x32xf32>
    %23 = vector.shape_cast %22 : vector<1x1x1x32xf32> to vector<1x32xf32>
    %24 = arith.truncf %5 : vector<16x32xf32> to vector<16x32xbf16>
    %cst_31 = arith.constant dense<0.000000e+00> : vector<16x32xf32>
    %25 = tpu.matmul %24, %17, %cst_31 {dimension_numbers = #tpu.dot_dimension_numbers<[1], [0], [0], [1], [0, 0, 1, 1], [], []>} : vector<16x32xbf16>, vector<32x32xbf16>, vector<16x32xf32> -> vector<16x32xf32>
    %26 = arith.truncf %25 : vector<16x32xf32> to vector<16x32xbf16>
    %27 = vector.broadcast %21 : vector<1x32xf32> to vector<16x32xf32>
    %28 = arith.mulf %25, %27 : vector<16x32xf32>
    %cst_32 = arith.constant dense<0.000000e+00> : vector<16xf32>
    %29 = vector.multi_reduction <add>, %28, %cst_32 [1] : vector<16x32xf32> to vector<16xf32>
    %30 = vector.shape_cast %29 : vector<16xf32> to vector<16x1xf32>
    %31 = arith.truncf %19 : vector<1x32xf32> to vector<1x32xbf16>
    "tpu.trace_start"() <{level = 10 : i32, message = "oh,nh->on"}> : () -> ()
    %cst_33 = arith.constant dense<0.000000e+00> : vector<1x16xf32>
    %32 = tpu.matmul %31, %26, %cst_33 {dimension_numbers = #tpu.dot_dimension_numbers<[1], [1], [0], [0], [0, 0, 1, 0], [], []>} : vector<1x32xbf16>, vector<16x32xbf16>, vector<1x16xf32> -> vector<1x16xf32>
    "tpu.trace_stop"() : () -> ()
    %33 = vector.broadcast %30 : vector<16x1xf32> to vector<16x16xf32>
    %34 = vector.broadcast %32 : vector<1x16xf32> to vector<16x16xf32>
    %35 = arith.addf %33, %34 : vector<16x16xf32>
    %cst_34 = arith.constant 0.000000e+00 : f32
    %36 = vector.broadcast %cst_34 : f32 to vector<16x16xf32>
    %37 = arith.cmpf oge, %35, %36 : vector<16x16xf32>
    %cst_35 = arith.constant 2.000000e-01 : f32
    %38 = vector.broadcast %cst_35 : f32 to vector<16x16xf32>
    %39 = arith.mulf %38, %35 : vector<16x16xf32>
    %40 = arith.select %37, %35, %39 : vector<16x16xi1>, vector<16x16xf32>
    %41 = arith.addf %40, %12 : vector<16x16xf32>
    %cst_36 = arith.constant dense<0xFF800000> : vector<16xf32>
    %42 = vector.multi_reduction <maximumf>, %41, %cst_36 [1] : vector<16x16xf32> to vector<16xf32>
    %43 = vector.shape_cast %42 : vector<16xf32> to vector<16x1xf32>
    %44 = vector.broadcast %43 : vector<16x1xf32> to vector<16x16xf32>
    %45 = arith.subf %41, %44 : vector<16x16xf32>
    %46 = math.exp %45 : vector<16x16xf32>
    %cst_37 = arith.constant dense<0.000000e+00> : vector<16xf32>
    %47 = vector.multi_reduction <add>, %46, %cst_37 [1] : vector<16x16xf32> to vector<16xf32>
    %48 = vector.shape_cast %47 : vector<16xf32> to vector<16x1xf32>
    %49 = tpu.reciprocal %48 {approx = true} : vector<16x1xf32> -> vector<16x1xf32>
    %50 = vector.broadcast %49 : vector<16x1xf32> to vector<16x16xf32>
    %51 = arith.mulf %46, %50 : vector<16x16xf32>
    %52 = arith.truncf %51 : vector<16x16xf32> to vector<16x16xbf16>
    %cst_38 = arith.constant dense<0.000000e+00> : vector<16x32xf32>
    %53 = tpu.matmul %52, %26, %cst_38 {dimension_numbers = #tpu.dot_dimension_numbers<[1], [0], [0], [1], [0, 0, 1, 1], [], []>} : vector<16x16xbf16>, vector<16x32xbf16>, vector<16x32xf32> -> vector<16x32xf32>
    %54 = vector.broadcast %23 : vector<1x32xf32> to vector<16x32xf32>
    %55 = arith.addf %53, %54 : vector<16x32xf32>
    %cst_39 = arith.constant 0.000000e+00 : f32
    %56 = vector.broadcast %cst_39 : f32 to vector<16x32xf32>
    %57 = arith.maximumf %55, %56 : vector<16x32xf32>
    %58 = arith.mulf %57, %57 : vector<16x32xf32>
    %cst_40 = arith.constant dense<0.000000e+00> : vector<16xf32>
    %59 = vector.multi_reduction <add>, %58, %cst_40 [1] : vector<16x32xf32> to vector<16xf32>
    %60 = vector.shape_cast %59 : vector<16xf32> to vector<16x1xf32>
    %61 = arith.truncf %57 : vector<16x32xf32> to vector<16x32xbf16>
    %cst_41 = arith.constant dense<0.000000e+00> : vector<16x32xf32>
    %62 = tpu.matmul %14, %61, %cst_41 {dimension_numbers = #tpu.dot_dimension_numbers<[1], [0], [0], [1], [0, 0, 1, 1], [], []>} : vector<16x16xbf16>, vector<16x32xbf16>, vector<16x32xf32> -> vector<16x32xf32>
    %cst_42 = arith.constant dense<0.000000e+00> : vector<16x1xf32>
    %63 = tpu.matmul %13, %60, %cst_42 {dimension_numbers = #tpu.dot_dimension_numbers<[1], [0], [0], [1], [0, 0, 1, 1], [], []>} : vector<16x16xf32>, vector<16x1xf32>, vector<16x1xf32> -> vector<16x1xf32>
    %64 = arith.mulf %57, %62 : vector<16x32xf32>
    %cst_43 = arith.constant dense<0.000000e+00> : vector<16xf32>
    %65 = vector.multi_reduction <add>, %64, %cst_43 [1] : vector<16x32xf32> to vector<16xf32>
    %66 = vector.shape_cast %65 : vector<16xf32> to vector<16x1xf32>
    %67 = arith.mulf %60, %15 : vector<16x1xf32>
    %68 = arith.addf %67, %63 : vector<16x1xf32>
    %cst_44 = arith.constant 2.000000e+00 : f32
    %69 = vector.broadcast %cst_44 : f32 to vector<16x1xf32>
    %70 = arith.mulf %69, %66 : vector<16x1xf32>
    %71 = arith.subf %68, %70 : vector<16x1xf32>
    %cst_45 = arith.constant 0.000000e+00 : f32
    %72 = vector.broadcast %cst_45 : f32 to vector<16x1xf32>
    %73 = arith.maximumf %71, %72 : vector<16x1xf32>
    %74 = math.tanh %73 : vector<16x1xf32>
    %cst_46 = arith.constant 2.000000e+00 : f32
    %75 = vector.broadcast %cst_46 : f32 to vector<16x1xf32>
    %76 = arith.mulf %75, %74 : vector<16x1xf32>
    %cst_47 = arith.constant 1.000000e+00 : f32
    %77 = vector.broadcast %cst_47 : f32 to vector<16x1xf32>
    %78 = arith.addf %77, %76 : vector<16x1xf32>
    %79 = tpu.reciprocal %78 {approx = true} : vector<16x1xf32> -> vector<16x1xf32>
    %80 = arith.mulf %74, %79 : vector<16x1xf32>
    %81 = vector.broadcast %79 : vector<16x1xf32> to vector<16x32xf32>
    %82 = arith.mulf %81, %5 : vector<16x32xf32>
    %83 = vector.broadcast %80 : vector<16x1xf32> to vector<16x32xf32>
    %84 = arith.mulf %83, %57 : vector<16x32xf32>
    %85 = arith.addf %82, %84 : vector<16x32xf32>
    %86 = vector.broadcast %80 : vector<16x1xf32> to vector<16x32xf32>
    %87 = arith.mulf %86, %11 : vector<16x32xf32>
    %88 = arith.addf %85, %87 : vector<16x32xf32>
    %c1_48 = arith.constant 1 : index
    %c0_49 = arith.constant 0 : index
    %c0_50 = arith.constant 0 : index
    %89 = vector.load %arg3[%c1_48, %c0_49, %c0_50] : memref<2x32x32xbf16, #tpu.memory_space<vmem>>, vector<1x32x32xbf16>
    %90 = vector.shape_cast %89 : vector<1x32x32xbf16> to vector<32x32xbf16>
    %c1_51 = arith.constant 1 : index
    %c0_52 = arith.constant 0 : index
    %c0_53 = arith.constant 0 : index
    %c0_54 = arith.constant 0 : index
    %91 = vector.load %arg4[%c1_51, %c0_52, %c0_53, %c0_54] : memref<2x3x1x32xf32, #tpu.memory_space<vmem>>, vector<1x1x1x32xf32>
    %92 = vector.shape_cast %91 : vector<1x1x1x32xf32> to vector<1x32xf32>
    %c1_55 = arith.constant 1 : index
    %c1_56 = arith.constant 1 : index
    %c0_57 = arith.constant 0 : index
    %c0_58 = arith.constant 0 : index
    %93 = vector.load %arg4[%c1_55, %c1_56, %c0_57, %c0_58] : memref<2x3x1x32xf32, #tpu.memory_space<vmem>>, vector<1x1x1x32xf32>
    %94 = vector.shape_cast %93 : vector<1x1x1x32xf32> to vector<1x32xf32>
    %c1_59 = arith.constant 1 : index
    %c2_60 = arith.constant 2 : index
    %c0_61 = arith.constant 0 : index
    %c0_62 = arith.constant 0 : index
    %95 = vector.load %arg4[%c1_59, %c2_60, %c0_61, %c0_62] : memref<2x3x1x32xf32, #tpu.memory_space<vmem>>, vector<1x1x1x32xf32>
    %96 = vector.shape_cast %95 : vector<1x1x1x32xf32> to vector<1x32xf32>
    %97 = arith.truncf %88 : vector<16x32xf32> to vector<16x32xbf16>
    %cst_63 = arith.constant dense<0.000000e+00> : vector<16x32xf32>
    %98 = tpu.matmul %97, %90, %cst_63 {dimension_numbers = #tpu.dot_dimension_numbers<[1], [0], [0], [1], [0, 0, 1, 1], [], []>} : vector<16x32xbf16>, vector<32x32xbf16>, vector<16x32xf32> -> vector<16x32xf32>
    %99 = arith.truncf %98 : vector<16x32xf32> to vector<16x32xbf16>
    %100 = vector.broadcast %94 : vector<1x32xf32> to vector<16x32xf32>
    %101 = arith.mulf %98, %100 : vector<16x32xf32>
    %cst_64 = arith.constant dense<0.000000e+00> : vector<16xf32>
    %102 = vector.multi_reduction <add>, %101, %cst_64 [1] : vector<16x32xf32> to vector<16xf32>
    %103 = vector.shape_cast %102 : vector<16xf32> to vector<16x1xf32>
    %104 = arith.truncf %92 : vector<1x32xf32> to vector<1x32xbf16>
    "tpu.trace_start"() <{level = 10 : i32, message = "oh,nh->on"}> : () -> ()
    %cst_65 = arith.constant dense<0.000000e+00> : vector<1x16xf32>
    %105 = tpu.matmul %104, %99, %cst_65 {dimension_numbers = #tpu.dot_dimension_numbers<[1], [1], [0], [0], [0, 0, 1, 0], [], []>} : vector<1x32xbf16>, vector<16x32xbf16>, vector<1x16xf32> -> vector<1x16xf32>
    "tpu.trace_stop"() : () -> ()
    %106 = vector.broadcast %103 : vector<16x1xf32> to vector<16x16xf32>
    %107 = vector.broadcast %105 : vector<1x16xf32> to vector<16x16xf32>
    %108 = arith.addf %106, %107 : vector<16x16xf32>
    %cst_66 = arith.constant 0.000000e+00 : f32
    %109 = vector.broadcast %cst_66 : f32 to vector<16x16xf32>
    %110 = arith.cmpf oge, %108, %109 : vector<16x16xf32>
    %cst_67 = arith.constant 2.000000e-01 : f32
    %111 = vector.broadcast %cst_67 : f32 to vector<16x16xf32>
    %112 = arith.mulf %111, %108 : vector<16x16xf32>
    %113 = arith.select %110, %108, %112 : vector<16x16xi1>, vector<16x16xf32>
    %114 = arith.addf %113, %12 : vector<16x16xf32>
    %cst_68 = arith.constant dense<0xFF800000> : vector<16xf32>
    %115 = vector.multi_reduction <maximumf>, %114, %cst_68 [1] : vector<16x16xf32> to vector<16xf32>
    %116 = vector.shape_cast %115 : vector<16xf32> to vector<16x1xf32>
    %117 = vector.broadcast %116 : vector<16x1xf32> to vector<16x16xf32>
    %118 = arith.subf %114, %117 : vector<16x16xf32>
    %119 = math.exp %118 : vector<16x16xf32>
    %cst_69 = arith.constant dense<0.000000e+00> : vector<16xf32>
    %120 = vector.multi_reduction <add>, %119, %cst_69 [1] : vector<16x16xf32> to vector<16xf32>
    %121 = vector.shape_cast %120 : vector<16xf32> to vector<16x1xf32>
    %122 = tpu.reciprocal %121 {approx = true} : vector<16x1xf32> -> vector<16x1xf32>
    %123 = vector.broadcast %122 : vector<16x1xf32> to vector<16x16xf32>
    %124 = arith.mulf %119, %123 : vector<16x16xf32>
    %125 = arith.truncf %124 : vector<16x16xf32> to vector<16x16xbf16>
    %cst_70 = arith.constant dense<0.000000e+00> : vector<16x32xf32>
    %126 = tpu.matmul %125, %99, %cst_70 {dimension_numbers = #tpu.dot_dimension_numbers<[1], [0], [0], [1], [0, 0, 1, 1], [], []>} : vector<16x16xbf16>, vector<16x32xbf16>, vector<16x32xf32> -> vector<16x32xf32>
    %127 = vector.broadcast %96 : vector<1x32xf32> to vector<16x32xf32>
    %128 = arith.addf %126, %127 : vector<16x32xf32>
    %cst_71 = arith.constant 0.000000e+00 : f32
    %129 = vector.broadcast %cst_71 : f32 to vector<16x32xf32>
    %130 = arith.maximumf %128, %129 : vector<16x32xf32>
    %131 = arith.mulf %130, %130 : vector<16x32xf32>
    %cst_72 = arith.constant dense<0.000000e+00> : vector<16xf32>
    %132 = vector.multi_reduction <add>, %131, %cst_72 [1] : vector<16x32xf32> to vector<16xf32>
    %133 = vector.shape_cast %132 : vector<16xf32> to vector<16x1xf32>
    %134 = arith.truncf %130 : vector<16x32xf32> to vector<16x32xbf16>
    %cst_73 = arith.constant dense<0.000000e+00> : vector<16x32xf32>
    %135 = tpu.matmul %14, %134, %cst_73 {dimension_numbers = #tpu.dot_dimension_numbers<[1], [0], [0], [1], [0, 0, 1, 1], [], []>} : vector<16x16xbf16>, vector<16x32xbf16>, vector<16x32xf32> -> vector<16x32xf32>
    %cst_74 = arith.constant dense<0.000000e+00> : vector<16x1xf32>
    %136 = tpu.matmul %13, %133, %cst_74 {dimension_numbers = #tpu.dot_dimension_numbers<[1], [0], [0], [1], [0, 0, 1, 1], [], []>} : vector<16x16xf32>, vector<16x1xf32>, vector<16x1xf32> -> vector<16x1xf32>
    %137 = arith.mulf %130, %135 : vector<16x32xf32>
    %cst_75 = arith.constant dense<0.000000e+00> : vector<16xf32>
    %138 = vector.multi_reduction <add>, %137, %cst_75 [1] : vector<16x32xf32> to vector<16xf32>
    %139 = vector.shape_cast %138 : vector<16xf32> to vector<16x1xf32>
    %140 = arith.mulf %133, %15 : vector<16x1xf32>
    %141 = arith.addf %140, %136 : vector<16x1xf32>
    %cst_76 = arith.constant 2.000000e+00 : f32
    %142 = vector.broadcast %cst_76 : f32 to vector<16x1xf32>
    %143 = arith.mulf %142, %139 : vector<16x1xf32>
    %144 = arith.subf %141, %143 : vector<16x1xf32>
    %cst_77 = arith.constant 0.000000e+00 : f32
    %145 = vector.broadcast %cst_77 : f32 to vector<16x1xf32>
    %146 = arith.maximumf %144, %145 : vector<16x1xf32>
    %147 = math.tanh %146 : vector<16x1xf32>
    %cst_78 = arith.constant 2.000000e+00 : f32
    %148 = vector.broadcast %cst_78 : f32 to vector<16x1xf32>
    %149 = arith.mulf %148, %147 : vector<16x1xf32>
    %cst_79 = arith.constant 1.000000e+00 : f32
    %150 = vector.broadcast %cst_79 : f32 to vector<16x1xf32>
    %151 = arith.addf %150, %149 : vector<16x1xf32>
    %152 = tpu.reciprocal %151 {approx = true} : vector<16x1xf32> -> vector<16x1xf32>
    %153 = arith.mulf %147, %152 : vector<16x1xf32>
    %154 = vector.broadcast %152 : vector<16x1xf32> to vector<16x32xf32>
    %155 = arith.mulf %154, %88 : vector<16x32xf32>
    %156 = vector.broadcast %153 : vector<16x1xf32> to vector<16x32xf32>
    %157 = arith.mulf %156, %130 : vector<16x32xf32>
    %158 = arith.addf %155, %157 : vector<16x32xf32>
    %159 = vector.broadcast %153 : vector<16x1xf32> to vector<16x32xf32>
    %160 = arith.mulf %159, %11 : vector<16x32xf32>
    %161 = arith.addf %158, %160 : vector<16x32xf32>
    %162 = arith.truncf %161 : vector<16x32xf32> to vector<16x32xbf16>
    %c0_80 = arith.constant 0 : index
    %c0_81 = arith.constant 0 : index
    %163 = vector.load %arg8[%c0_80, %c0_81] : memref<32x128xbf16, #tpu.memory_space<vmem>>, vector<32x128xbf16>
    %cst_82 = arith.constant dense<0.000000e+00> : vector<16x128xf32>
    %164 = tpu.matmul %162, %163, %cst_82 {dimension_numbers = #tpu.dot_dimension_numbers<[1], [0], [0], [1], [0, 0, 1, 1], [], []>} : vector<16x32xbf16>, vector<32x128xbf16>, vector<16x128xf32> -> vector<16x128xf32>
    %c0_83 = arith.constant 0 : index
    %c0_84 = arith.constant 0 : index
    %165 = vector.load %arg9[%c0_83, %c0_84] : memref<1x128xf32, #tpu.memory_space<vmem>>, vector<1x128xf32>
    %166 = vector.broadcast %165 : vector<1x128xf32> to vector<16x128xf32>
    %167 = arith.addf %164, %166 : vector<16x128xf32>
    %c0_85 = arith.constant 0 : index
    %c0_86 = arith.constant 0 : index
    %168 = vector.load %arg10[%c0_85, %c0_86] : memref<16x128xf32, #tpu.memory_space<vmem>>, vector<16x128xf32>
    tpu.vector_store %arg10[%c0_85, %c0_86], %167 {strides = array<i32>} : memref<16x128xf32, #tpu.memory_space<vmem>>, vector<16x128xf32>,
    return
  }
  func.func @transform_0(%arg0: i32) -> (i32, i32, i32) {
    %c0_i32 = arith.constant 0 : i32
    %c0_i32_0 = arith.constant 0 : i32
    %c0_i32_1 = arith.constant 0 : i32
    %c0_i32_2 = arith.constant 0 : i32
    return %c0_i32, %c0_i32_0, %c0_i32_1 : i32, i32, i32
  }
  func.func @transform_1(%arg0: i32) -> (i32, i32, i32) {
    %c0_i32 = arith.constant 0 : i32
    %c0_i32_0 = arith.constant 0 : i32
    %c0_i32_1 = arith.constant 0 : i32
    %c0_i32_2 = arith.constant 0 : i32
    return %c0_i32, %c0_i32_0, %c0_i32_1 : i32, i32, i32
  }
  func.func @transform_2(%arg0: i32) -> (i32, i32, i32) {
    %c0_i32 = arith.constant 0 : i32
    %c0_i32_0 = arith.constant 0 : i32
    %c0_i32_1 = arith.constant 0 : i32
    %c0_i32_2 = arith.constant 0 : i32
    return %c0_i32, %c0_i32_0, %c0_i32_1 : i32, i32, i32
  }
  func.func @transform_3(%arg0: i32) -> (i32, i32, i32, i32) {
    %c0_i32 = arith.constant 0 : i32
    %c0_i32_0 = arith.constant 0 : i32
    %c0_i32_1 = arith.constant 0 : i32
    %c0_i32_2 = arith.constant 0 : i32
    %c0_i32_3 = arith.constant 0 : i32
    return %c0_i32, %c0_i32_0, %c0_i32_1, %c0_i32_2 : i32, i32, i32, i32
  }
  func.func @transform_4(%arg0: i32) -> (i32, i32) {
    %c0_i32 = arith.constant 0 : i32
    %c0_i32_0 = arith.constant 0 : i32
    %c0_i32_1 = arith.constant 0 : i32
    return %c0_i32, %c0_i32_0 : i32, i32
  }
  func.func @transform_5(%arg0: i32) -> (i32, i32) {
    %c0_i32 = arith.constant 0 : i32
    %c0_i32_0 = arith.constant 0 : i32
    %c0_i32_1 = arith.constant 0 : i32
    return %c0_i32, %c0_i32_0 : i32, i32
  }
  func.func @transform_6(%arg0: i32) -> (i32, i32) {
    %c0_i32 = arith.constant 0 : i32
    %c0_i32_0 = arith.constant 0 : i32
    %c0_i32_1 = arith.constant 0 : i32
    return %c0_i32, %c0_i32_0 : i32, i32
  }
  func.func @transform_7(%arg0: i32) -> (i32, i32) {
    %c0_i32 = arith.constant 0 : i32
    %c0_i32_0 = arith.constant 0 : i32
    %c0_i32_1 = arith.constant 0 : i32
    return %c0_i32, %c0_i32_0 : i32, i32
  }
  func.func @transform_8(%arg0: i32) -> (i32, i32) {
    %c0_i32 = arith.constant 0 : i32
    %c0_i32_0 = arith.constant 0 : i32
    %c0_i32_1 = arith.constant 0 : i32
    return %c0_i32, %c0_i32_0 : i32, i32
  }
  func.func @transform_9(%arg0: i32) -> (i32, i32) {
    %c0_i32 = arith.constant 0 : i32
    %c0_i32_0 = arith.constant 0 : i32
    %c0_i32_1 = arith.constant 0 : i32
    return %c0_i32, %c0_i32_0 : i32, i32
  }
}

</mosaic_0001>

<bundles_post_ra>
// kernel: dual_gate_gat_forward.1
= control target key start
LH: loop header
LB: loop body
LE: loop exit
PB: predicated region body
PF: predicated region fallthrough
CT: control target
= control target key end

     0   :  { %vm41_vm0 = vcmask 1043456   ;;  %vm37_vm1 = vcmask 64512   ;;  %vm114_vm2 = vcmask 261120   ;;  %vm175_vm4 = vcmask 130048   ;;  %s962_s1 = inlined_call_operand.vmem [shape: bf16[2,8,32], index: 1, kind: input, shape index: {}]   ;;  %s963_s0 = inlined_call_operand.vmem [shape: f32[2,16,8], index: 0, kind: input, shape index: {}]   ;;  %s964_s2 = inlined_call_operand.vmem [shape: bf16[2,32,32], index: 2, kind: input, shape index: {}]   ;;  %s965_s3 = inlined_call_operand.vmem [shape: f32[2,3,1,32], index: 3, kind: input, shape index: {}]   ;;  %s966_s4 = inlined_call_operand.vmem [shape: f32[16,16], index: 4, kind: input, shape index: {}]   ;;  %s967_s5 = inlined_call_operand.vmem [shape: f32[16,16], index: 5, kind: input, shape index: {}]   ;;  %s968_s6 = inlined_call_operand.vmem [shape: f32[16,1], index: 6, kind: input, shape index: {}]   ;;  %s969_s8 = inlined_call_operand.vmem [shape: f32[1,128], index: 8, kind: input, shape index: {}]   ;;  %s970_s7 = inlined_call_operand.vmem [shape: bf16[32,128], index: 7, kind: input, shape index: {}]   ;;  %s971_s9 = inlined_call_operand.vmem [shape: f32[16,128], index: 9, kind: output, shape index: {}]  }
   0x1   :  { %v36_v0 = vld [vmem:[%s962_s1] sm:$0xf]  ;;  %v34_v2 = vld [vmem:[%s963_s0 + $0x8] sm:$0xff]  ;;  %v614_v48 = vld [vmem:[%s962_s1 + $0x4] sm:$0xf] }
   0x2   :  { %v33_v1 = vld [vmem:[%s963_s0] sm:$0xff]  ;;  %v43_v3 = vsel %vm41_vm0, %v36_v0, 0  ;;  %v663_v5 = vld [vmem:[%s964_s2 + $0x8] sm:$0xff]  ;;  %v612_v49 = vld [vmem:[%s963_s0 + $0x10] sm:$0xff]  ;;  %v69_v51 = vsel %vm41_vm0, %v614_v48, 0 }
   0x3   :  { %v35_v4 = vpack.c.bf16 %v34_v2, %v33_v1  ;;  %52 = vmatpush.bf16.msra.mxu0 %v43_v3  ;;  %124 = vmatpush.bf16.msra.mxu2 %v663_v5  ;;  %v662_v6 = vld [vmem:[%s964_s2] sm:$0xff]  ;;  %v804_v34 = vld [vmem:[%s966_s4 + $0x8] sm:$0xff]  ;;  %v613_v50 = vld [vmem:[%s963_s0 + $0x18] sm:$0xff] }
   0x4   :  { %v672_v10 = vld [vmem:[%s965_s3 + $0x1] ss:$0 sm:$0xff]  ;;  %v96_v19 = vld [vmem:[%s965_s3] sm:$0x1]  ;;  %v62_v52 = vpack.c.bf16 %v613_v50, %v612_v49  ;;  %78 = vmatpush.bf16.msra.mxu1 %v69_v51  ;;  %v673_v60 = vld [vmem:[%s965_s3 + $0x2] ss:$0 sm:$0xff] }
   0x5   :  { %v144_v20 = vpack.c.bf16 %v96_v19, %v96_v19  ;;  %v797_v28 = vld [vmem:[%s966_s4] sm:$0xff] }
   0x6   :  { %611 = vmatmul.msk.bf16.vlgmr.msra.gmra.mxu0 %vm37_vm1, %v35_v4  ;;  %v835_v5 = vld [vmem:[%s967_s5] sm:$0xff] }
   0x7   :  { %125 = vmatpush.bf16.msra.mxu2 %v662_v6  ;;  %615 = vmatmul.msk.bf16.vlgmr.msra.gmra.mxu1 %vm37_vm1, %v62_v52  ;;  %v840_v6 = vld [vmem:[%s967_s5 + $0x8] sm:$0xff]  ;;  %v665_v52 = vld [vmem:[%s964_s2 + $0x18] sm:$0xff] }
  0x83   :  { %v777_v7 = vpop.f32.mrf.mxu0 }
  0x8b   :  { %v779_v8 = vpop.f32.mrf.mxu0 }
  0x8c   :  { %v101_v9 = vpack.c.bf16 %v779_v8, %v777_v7 }
  0x8e   :  { %626 = vmatmul.msk.bf16.vlgmr.msra.gmra.mxu2 %vm114_vm2, %v101_v9 }
 0x111   :  { %v127_v11 = vpop.f32.mrf.mxu2 }
 0x112   :  { %v136_v12 = vmul.f32 %v672_v10, %v127_v11 }
 0x114   :  { %v138_v13 = vsel %vm114_vm2, %v136_v12, 0.0 }
 0x115   :  { %139 = vadd.xlane.f32.xlu0 %v138_v13  ;;  %v853_v13 = vpop.f32.mrf.mxu1 }
 0x119   :  { %v129_v14 = vpop.f32.mrf.mxu2 }
 0x11a   :  { %v137_v15 = vmul.f32 %v672_v10, %v129_v14  ;;  %v132_v16 = vpack.c.bf16 %v129_v14, %v127_v11  ;;  %v848_v11 = vpack.c.bf16 %v840_v6, %v835_v5 }
 0x11c   :  { %212 = vmatpush.bf16.msrb.mxu0 %v132_v16  ;;  %v141_v17 = vsel %vm114_vm2, %v137_v15, 0.0  ;;  %v149_v18 = vsel %vm114_vm2, %v132_v16, 0 }
 0x11d   :  { %142 = vadd.xlane.f32.xlu0 %v141_v17  ;;  %158 = vmatpush.bf16.xpose.msra.mxu3 %v149_v18  ;;  %v855_v16 = vpop.f32.mrf.mxu1 }
 0x124   :  { %627 = vmatmul.msk.bf16.vlgmr.msra.gmra.mxu3 %vm114_vm2, %v144_v20 }
 0x125   :  { %367 = vmatpush.bf16.msrb.mxu3 %v665_v52 }
 0x188   :  { %v140_v21 = vpop.xlane.xlu0 %139 }
 0x190   :  { %v143_v24 = vpop.xlane.xlu0 %142 }
 0x1a7   :  { %v160_v22 = vpop.f32.mrf.mxu3 }
 0x1a8   :  { %v164_v23 = vperm.slane %v160_v22, 0 }
 0x1aa   :  { %v165_v25 = vadd.f32 %v164_v23, %v140_v21  ;;  %v166_v26 = vadd.f32 %v164_v23, %v143_v24  ;;  %v709_v23 = vmov 0   ;;  %v868_v24 = vld [vmem:[%s968_s6] sm:$0xff] }
 0x1ab   :  { %669 = vset.pattern.permute.xlu1 %v709_v23  ;;  %670 = vset.pattern.permute.xlu0 %v709_v23 }
 0x1ac   :  { %v169_v27 = vmul.f32 0.2, %v165_v25  ;;  %vm167_vm3 = vcmp.ge.f32.partialorder %v165_v25, 0.0  ;;  %v170_v29 = vmul.f32 0.2, %v166_v26  ;;  %vm168_vm5 = vcmp.ge.f32.partialorder %v166_v26, 0.0  ;;  %671 = vset.pattern.permute.xlu2 %v709_v23 }
 0x1ae   :  { %v171_v30 = vsel %vm167_vm3, %v165_v25, %v169_v27  ;;  %v172_v35 = vsel %vm168_vm5, %v166_v26, %v170_v29 }
 0x1af   :  { %v162_v31 = vpop.f32.mrf.mxu3  ;;  %v173_v32 = vadd.f32 %v171_v30, %v797_v28  ;;  %v174_v36 = vadd.f32 %v172_v35, %v804_v34 }
 0x1b1   :  { %v176_v33 = vsel %vm175_vm4, %v173_v32, -inf  ;;  %v179_v37 = vsel %vm175_vm4, %v174_v36, -inf }
 0x1b2   :  { %177 = vmax.xlane.f32.xlu1 %v176_v33 }
 0x1ba   :  { %180 = vmax.xlane.f32.xlu1 %v179_v37 }
 0x225   :  { %v178_v38 = vpop.xlane.xlu1 %177 }
 0x226   :  { %v182_v39 = vsub.f32 %v173_v32, %v178_v38  ;;  %v874_v32 = vld [vmem:[%s968_s6 + $0x8] sm:$0xff] }
 0x228   :  { %v184_v40 = vmul.f32 1.442695, %v182_v39 }
 0x22a   :  { %677 = vpow2.f32 %v184_v40 }
 0x22d   :  { %v181_v41 = vpop.xlane.xlu1 %180 }
 0x22e   :  { %v183_v42 = vsub.f32 %v174_v36, %v181_v41 }
 0x230   :  { %v678_v43 = vpop.eup %677  ;;  %v186_v44 = vmul.f32 1.442695, %v183_v42 }
 0x231   :  { %v188_v45 = vsel %vm175_vm4, %v678_v43, 0.0 }
 0x232   :  { %679 = vpow2.f32 %v186_v44  ;;  %189 = vadd.xlane.f32.xlu2 %v188_v45 }
 0x238   :  { %v680_v46 = vpop.eup %679 }
 0x239   :  { %v191_v47 = vsel %vm175_vm4, %v680_v46, 0.0 }
 0x23a   :  { %192 = vadd.xlane.f32.xlu2 %v191_v47 }
 0x2a5   :  { %v190_v53 = vpop.xlane.xlu2 %189 }
 0x2a6   :  { %681 = vrcp.f32 %v190_v53  ;;  %v664_v53 = vld [vmem:[%s964_s2 + $0x10] sm:$0xff] }
 0x2a7   :  { %368 = vmatpush.bf16.msrb.mxu3 %v664_v53 }
 0x2ac   :  { %v682_v55 = vpop.eup %681 }
 0x2ad   :  { %v193_v54 = vpop.xlane.xlu2 %192  ;;  %v196_v57 = vmul.f32 %v682_v55, %v678_v43 }
 0x2ae   :  { %683 = vrcp.f32 %v193_v54 }
 0x2b4   :  { %v684_v56 = vpop.eup %683 }
 0x2b5   :  { %v197_v58 = vmul.f32 %v684_v56, %v680_v46 }
 0x2b7   :  { %v198_v59 = vpack.c.bf16 %v197_v58, %v196_v57 }
 0x2b9   :  { %628 = vmatmul.msk.bf16.vlgmr.msrb.gmra.mxu0 %vm175_vm4, %v198_v59 }
 0x336   :  { %v214_v61 = vpop.f32.mrf.mxu0 }
 0x337   :  { %v215_v62 = vadd.f32 %v673_v60, %v214_v61 }
 0x339   :  { %v825_v63 = vmax.f32 %v215_v62, 0.0 }
 0x33b   :  { %v221_v0 = vmul.f32 %v825_v63, %v825_v63 }
 0x33d   :  { %v223_v1 = vsel %vm114_vm2, %v221_v0, 0.0 }
 0x33e   :  { %v216_v2 = vpop.f32.mrf.mxu0  ;;  %224 = vadd.xlane.f32.xlu1 %v223_v1 }
 0x33f   :  { %v217_v3 = vadd.f32 %v673_v60, %v216_v2 }
 0x341   :  { %v830_v4 = vmax.f32 %v217_v3, 0.0 }
 0x343   :  { %v229_v9 = vpack.c.bf16 %v830_v4, %v825_v63  ;;  %v222_v10 = vmul.f32 %v830_v4, %v830_v4 }
 0x345   :  { %240 = vmatpush.bf16.msrb.mxu1 %v229_v9  ;;  %v226_v12 = vsel %vm114_vm2, %v222_v10, 0.0 }
 0x346   :  { %227 = vadd.xlane.f32.xlu0 %v226_v12 }
 0x348   :  { %629 = vmatmul.msk.bf16.vlgmr.msrb.gmra.mxu1 %vm175_vm4, %v848_v11 }
 0x3b1   :  { %v225_v15 = vpop.xlane.xlu1 %224 }
 0x3b2   :  { %v284_v26 = vmul.f32 %v225_v15, %v868_v24 }
 0x3b9   :  { %v228_v14 = vpop.xlane.xlu0 %227 }
 0x3ba   :  { %267 = vmatpush.msrb.mxu2 %v228_v14  ;;  %v285_v36 = vmul.f32 %v228_v14, %v874_v32 }
 0x3bc   :  { %268 = vmatpush.msrb.mxu2 %v225_v15 }
 0x3bd   :  { %630 = vmatmul.msk.f32.vlgmr.msrb.gmra.mxu2 %vm175_vm4, %v835_v5 }
 0x3c5   :  { %v242_v17 = vpop.f32.mrf.mxu1  ;;  %631 = vmatmul.msk.f32.gmra.mxu2 %vm175_vm4, %v840_v6 }
 0x3c6   :  { %v276_v18 = vmul.f32 %v242_v17, %v825_v63 }
 0x3c8   :  { %v278_v19 = vsel %vm114_vm2, %v276_v18, 0.0 }
 0x3c9   :  { %279 = vadd.xlane.f32.xlu2 %v278_v19  ;;  %v636_v19 = vld [vmem:[%s965_s3 + $0x3] sm:$0x1] }
 0x3cd   :  { %v244_v20 = vpop.f32.mrf.mxu1 }
 0x3ce   :  { %v277_v21 = vmul.f32 %v244_v20, %v830_v4  ;;  %v387_v20 = vpack.c.bf16 %v636_v19, %v636_v19 }
 0x3d0   :  { %v281_v22 = vsel %vm114_vm2, %v277_v21, 0.0 }
 0x3d1   :  { %282 = vadd.xlane.f32.xlu0 %v281_v22 }
 0x43c   :  { %v280_v25 = vpop.xlane.xlu2 %279 }
 0x43d   :  { %v288_v29 = vmul.f32 2.0, %v280_v25 }
 0x440   :  { %v270_v27 = vpop.f32.mrf.mxu2 }
 0x441   :  { %v286_v30 = vadd.f32 %v284_v26, %v270_v27 }
 0x443   :  { %v290_v31 = vsub.f32 %v286_v30, %v288_v29 }
 0x444   :  { %v283_v35 = vpop.xlane.xlu0 %282 }
 0x445   :  { %v292_v33 = vmax.f32 %v290_v31, 0.0  ;;  %v289_v38 = vmul.f32 2.0, %v283_v35 }
 0x447   :  { %685 = vtanh.f32 %v292_v33 }
 0x448   :  { %v273_v37 = vpop.f32.mrf.mxu2 }
 0x449   :  { %v287_v39 = vadd.f32 %v285_v36, %v273_v37 }
 0x44b   :  { %v291_v40 = vsub.f32 %v287_v39, %v289_v38 }
 0x44d   :  { %v686_v41 = vpop.eup %685  ;;  %v293_v42 = vmax.f32 %v291_v40, 0.0 }
 0x44e   :  { %v296_v43 = vmul.f32 2.0, %v686_v41 }
 0x44f   :  { %687 = vtanh.f32 %v293_v42 }
 0x450   :  { %v298_v44 = vadd.f32 1.0, %v296_v43 }
 0x452   :  { %689 = vrcp.f32 %v298_v44 }
 0x455   :  { %v688_v45 = vpop.eup %687 }
 0x456   :  { %v297_v46 = vmul.f32 2.0, %v688_v45 }
 0x458   :  { %v690_v47 = vpop.eup %689  ;;  %v299_v48 = vadd.f32 1.0, %v297_v46 }
 0x459   :  { %306 = vperm.xlu1 %669, %v690_v47   ;;  %v302_v49 = vmul.f32 %v690_v47, %v686_v41 }
 0x45a   :  { %691 = vrcp.f32 %v299_v48 }
 0x45b   :  { %318 = vperm.xlu0 %670, %v302_v49  }
 0x460   :  { %v692_v50 = vpop.eup %691 }
 0x461   :  { %311 = vperm.xlu2 %671, %v692_v50   ;;  %v303_v51 = vmul.f32 %v692_v50, %v688_v45 }
 0x469   :  { %323 = vperm.xlu2 %671, %v303_v51  }
 0x4bb   :  { %v312_v54 = vpop.permute.xlu2 %311 }
 0x4bc   :  { %v315_v58 = vmul.f32 %v312_v54, %v779_v8 }
 0x4c3   :  { %v324_v55 = vpop.permute.xlu2 %323 }
 0x4c4   :  { %v327_v56 = vmul.f32 %v324_v55, %v830_v4  ;;  %v331_v0 = vmul.f32 %v324_v55, %v855_v16  ;;  %v675_v55 = vld [vmem:[%s965_s3 + $0x5] ss:$0 sm:$0xff] }
 0x4c6   :  { %v329_v60 = vadd.f32 %v327_v56, %v315_v58 }
 0x4c8   :  { %v889_v3 = vadd.f32 %v331_v0, %v329_v60 }
 0x4cb   :  { %v307_v57 = vpop.permute.xlu1 %306 }
 0x4cc   :  { %v314_v61 = vmul.f32 %v307_v57, %v777_v7  ;;  %v674_v7 = vld [vmem:[%s965_s3 + $0x4] ss:$0 sm:$0xff] }
 0x4cd   :  { %v319_v59 = vpop.permute.xlu0 %318 }
 0x4ce   :  { %v326_v62 = vmul.f32 %v319_v59, %v825_v63  ;;  %v330_v2 = vmul.f32 %v319_v59, %v853_v13 }
 0x4d0   :  { %v328_v1 = vadd.f32 %v326_v62, %v314_v61 }
 0x4d2   :  { %v891_v9 = vadd.f32 %v330_v2, %v328_v1 }
 0x4d4   :  { %v345_v4 = vpack.c.bf16 %v889_v3, %v891_v9 }
 0x4d6   :  { %647 = vmatmul.msk.bf16.vlgmr.msrb.gmra.mxu3 %vm114_vm2, %v345_v4 }
 0x559   :  { %v370_v8 = vpop.f32.mrf.mxu3 }
 0x55a   :  { %v379_v63 = vmul.f32 %v674_v7, %v370_v8 }
 0x55c   :  { %v381_v10 = vsel %vm114_vm2, %v379_v63, 0.0 }
 0x55d   :  { %382 = vadd.xlane.f32.xlu1 %v381_v10 }
 0x561   :  { %v372_v12 = vpop.f32.mrf.mxu3 }
 0x562   :  { %v375_v14 = vpack.c.bf16 %v372_v12, %v370_v8  ;;  %v380_v15 = vmul.f32 %v674_v7, %v372_v12 }
 0x564   :  { %454 = vmatpush.bf16.msra.mxu1 %v375_v14  ;;  %v384_v17 = vsel %vm114_vm2, %v380_v15, 0.0  ;;  %v392_v18 = vsel %vm114_vm2, %v375_v14, 0 }
 0x565   :  { %385 = vadd.xlane.f32.xlu2 %v384_v17  ;;  %401 = vmatpush.bf16.xpose.msra.mxu0 %v392_v18 }
 0x56c   :  { %648 = vmatmul.msk.bf16.vlgmr.msra.gmra.mxu0 %vm114_vm2, %v387_v20 }
 0x5d0   :  { %v383_v23 = vpop.xlane.xlu1 %382 }
 0x5d8   :  { %v386_v25 = vpop.xlane.xlu2 %385 }
 0x5e9   :  { %v403_v21 = vpop.f32.mrf.mxu0 }
 0x5ea   :  { %v407_v22 = vperm.slane %v403_v21, 0 }
 0x5ec   :  { %v408_v26 = vadd.f32 %v407_v22, %v383_v23  ;;  %v409_v27 = vadd.f32 %v407_v22, %v386_v25 }
 0x5ee   :  { %v412_v29 = vmul.f32 0.2, %v408_v26  ;;  %v413_v30 = vmul.f32 0.2, %v409_v27  ;;  %vm411_vm6 = vcmp.ge.f32.partialorder %v409_v27, 0.0  ;;  %vm410_vm7 = vcmp.ge.f32.partialorder %v408_v26, 0.0 }
 0x5f0   :  { %v415_v31 = vsel %vm411_vm6, %v409_v27, %v413_v30  ;;  %v414_v33 = vsel %vm410_vm7, %v408_v26, %v412_v29 }
 0x5f1   :  { %v405_v35 = vpop.f32.mrf.mxu0  ;;  %v417_v36 = vadd.f32 %v415_v31, %v804_v34  ;;  %v416_v37 = vadd.f32 %v414_v33, %v797_v28 }
 0x5f3   :  { %v421_v38 = vsel %vm175_vm4, %v417_v36, -inf  ;;  %v418_v39 = vsel %vm175_vm4, %v416_v37, -inf }
 0x5f4   :  { %422 = vmax.xlane.f32.xlu1 %v421_v38  ;;  %419 = vmax.xlane.f32.xlu0 %v418_v39 }
 0x667   :  { %v423_v40 = vpop.xlane.xlu1 %422  ;;  %v420_v41 = vpop.xlane.xlu0 %419 }
 0x668   :  { %v425_v42 = vsub.f32 %v417_v36, %v423_v40  ;;  %v424_v43 = vsub.f32 %v416_v37, %v420_v41  ;;  %v667_v41 = vld [vmem:[%s970_s7 + $0x8] sm:$0xff] }
 0x669   :  { %597 = vmatpush.bf16.msrb.mxu0 %v667_v41 }
 0x66a   :  { %v428_v44 = vmul.f32 1.442695, %v425_v42  ;;  %v426_v45 = vmul.f32 1.442695, %v424_v43  ;;  %v666_v42 = vld [vmem:[%s970_s7] sm:$0xff] }
 0x66c   :  { %693 = vpow2.f32 %v428_v44 }
 0x66d   :  { %695 = vpow2.f32 %v426_v45  ;;  %598 = vmatpush.bf16.msrb.mxu0 %v666_v42 }
 0x672   :  { %v694_v46 = vpop.eup %693 }
 0x673   :  { %v696_v47 = vpop.eup %695  ;;  %v433_v34 = vsel %vm175_vm4, %v694_v46, 0.0 }
 0x674   :  { %434 = vadd.xlane.f32.xlu1 %v433_v34  ;;  %v430_v28 = vsel %vm175_vm4, %v696_v47, 0.0 }
 0x675   :  { %431 = vadd.xlane.f32.xlu2 %v430_v28 }
 0x6e7   :  { %v435_v48 = vpop.xlane.xlu1 %434 }
 0x6e8   :  { %697 = vrcp.f32 %v435_v48  ;;  %v432_v49 = vpop.xlane.xlu2 %431 }
 0x6e9   :  { %699 = vrcp.f32 %v432_v49 }
 0x6ee   :  { %v698_v50 = vpop.eup %697 }
 0x6ef   :  { %v700_v51 = vpop.eup %699  ;;  %v439_v52 = vmul.f32 %v698_v50, %v694_v46 }
 0x6f0   :  { %v438_v53 = vmul.f32 %v700_v51, %v696_v47 }
 0x6f2   :  { %v440_v54 = vpack.c.bf16 %v439_v52, %v438_v53 }
 0x6f4   :  { %649 = vmatmul.msk.bf16.vlgmr.msra.gmra.mxu1 %vm175_vm4, %v440_v54 }
 0x771   :  { %v456_v56 = vpop.f32.mrf.mxu1 }
 0x772   :  { %v457_v57 = vadd.f32 %v675_v55, %v456_v56 }
 0x774   :  { %v916_v58 = vmax.f32 %v457_v57, 0.0 }
 0x776   :  { %v463_v59 = vmul.f32 %v916_v58, %v916_v58 }
 0x778   :  { %v465_v60 = vsel %vm114_vm2, %v463_v59, 0.0 }
 0x779   :  { %v458_v61 = vpop.f32.mrf.mxu1  ;;  %466 = vadd.xlane.f32.xlu1 %v465_v60 }
 0x77a   :  { %v459_v62 = vadd.f32 %v675_v55, %v458_v61 }
 0x77c   :  { %v921_v0 = vmax.f32 %v459_v62, 0.0 }
 0x77e   :  { %v471_v1 = vpack.c.bf16 %v921_v0, %v916_v58  ;;  %v464_v2 = vmul.f32 %v921_v0, %v921_v0 }
 0x780   :  { %479 = vmatpush.bf16.msra.mxu2 %v471_v1  ;;  %v468_v4 = vsel %vm114_vm2, %v464_v2, 0.0 }
 0x781   :  { %469 = vadd.xlane.f32.xlu2 %v468_v4 }
 0x783   :  { %650 = vmatmul.msk.bf16.vlgmr.msra.gmra.mxu2 %vm175_vm4, %v848_v11 }
 0x7ec   :  { %v467_v8 = vpop.xlane.xlu1 %466 }
 0x7ed   :  { %v517_v18 = vmul.f32 %v467_v8, %v868_v24 }
 0x7f4   :  { %v470_v7 = vpop.xlane.xlu2 %469 }
 0x7f5   :  { %500 = vmatpush.msra.mxu3 %v470_v7  ;;  %v518_v23 = vmul.f32 %v470_v7, %v874_v32 }
 0x7f7   :  { %501 = vmatpush.msra.mxu3 %v467_v8 }
 0x7f8   :  { %651 = vmatmul.msk.f32.vlgmr.msra.gmra.mxu3 %vm175_vm4, %v835_v5 }
 0x800   :  { %652 = vmatmul.msk.f32.gmra.mxu3 %vm175_vm4, %v840_v6 }
 0x806   :  { %v481_v63 = vpop.f32.mrf.mxu2 }
 0x807   :  { %v509_v10 = vmul.f32 %v481_v63, %v916_v58 }
 0x809   :  { %v511_v12 = vsel %vm114_vm2, %v509_v10, 0.0 }
 0x80a   :  { %512 = vadd.xlane.f32.xlu2 %v511_v12 }
 0x80e   :  { %v483_v14 = vpop.f32.mrf.mxu2 }
 0x80f   :  { %v510_v15 = vmul.f32 %v483_v14, %v921_v0 }
 0x811   :  { %v514_v11 = vsel %vm114_vm2, %v510_v15, 0.0 }
 0x812   :  { %515 = vadd.xlane.f32.xlu0 %v514_v11 }
 0x87b   :  { %v503_v17 = vpop.f32.mrf.mxu3 }
 0x87c   :  { %v519_v5 = vadd.f32 %v517_v18, %v503_v17 }
 0x87d   :  { %v513_v19 = vpop.xlane.xlu2 %512 }
 0x87e   :  { %v521_v20 = vmul.f32 2.0, %v513_v19 }
 0x880   :  { %v523_v21 = vsub.f32 %v519_v5, %v521_v20 }
 0x882   :  { %v525_v6 = vmax.f32 %v523_v21, 0.0 }
 0x883   :  { %v506_v22 = vpop.f32.mrf.mxu3 }
 0x884   :  { %701 = vtanh.f32 %v525_v6  ;;  %v520_v26 = vadd.f32 %v518_v23, %v506_v22 }
 0x885   :  { %v516_v25 = vpop.xlane.xlu0 %515 }
 0x886   :  { %v522_v27 = vmul.f32 2.0, %v516_v25 }
 0x888   :  { %v524_v29 = vsub.f32 %v520_v26, %v522_v27 }
 0x88a   :  { %v702_v30 = vpop.eup %701  ;;  %v526_v31 = vmax.f32 %v524_v29, 0.0 }
 0x88b   :  { %v529_v33 = vmul.f32 2.0, %v702_v30 }
 0x88c   :  { %703 = vtanh.f32 %v526_v31 }
 0x88d   :  { %v531_v35 = vadd.f32 1.0, %v529_v33 }
 0x88f   :  { %705 = vrcp.f32 %v531_v35 }
 0x892   :  { %v704_v24 = vpop.eup %703 }
 0x893   :  { %v530_v36 = vmul.f32 2.0, %v704_v24 }
 0x895   :  { %v706_v37 = vpop.eup %705  ;;  %v532_v38 = vadd.f32 1.0, %v530_v36 }
 0x896   :  { %539 = vperm.xlu1 %669, %v706_v37   ;;  %v535_v39 = vmul.f32 %v706_v37, %v702_v30 }
 0x897   :  { %707 = vrcp.f32 %v532_v38 }
 0x898   :  { %551 = vperm.xlu0 %670, %v535_v39  }
 0x89d   :  { %v708_v32 = vpop.eup %707 }
 0x89e   :  { %544 = vperm.xlu2 %671, %v708_v32   ;;  %v536_v40 = vmul.f32 %v708_v32, %v704_v24 }
 0x8a0   :  { %556 = vperm.xlu1 %669, %v536_v40  }
 0x8f8   :  { %v545_v46 = vpop.permute.xlu2 %544 }
 0x8f9   :  { %v548_v28 = vmul.f32 %v545_v46, %v889_v3 }
 0x908   :  { %v540_v43 = vpop.permute.xlu1 %539 }
 0x909   :  { %v547_v47 = vmul.f32 %v540_v43, %v891_v9  ;;  %v676_v9 = vld [vmem:[%s969_s8] ss:$0 sm:$0xff] }
 0x90a   :  { %v552_v44 = vpop.permute.xlu0 %551 }
 0x90b   :  { %v559_v45 = vmul.f32 %v552_v44, %v916_v58  ;;  %v563_v50 = vmul.f32 %v552_v44, %v853_v13 }
 0x90d   :  { %v561_v48 = vadd.f32 %v559_v45, %v547_v47 }
 0x90f   :  { %v565_v53 = vadd.f32 %v563_v50, %v561_v48 }
 0x912   :  { %v557_v34 = vpop.permute.xlu1 %556 }
 0x913   :  { %v560_v49 = vmul.f32 %v557_v34, %v921_v0  ;;  %v564_v52 = vmul.f32 %v557_v34, %v855_v16 }
 0x915   :  { %v562_v51 = vadd.f32 %v560_v49, %v548_v28 }
 0x917   :  { %v566_v54 = vadd.f32 %v564_v52, %v562_v51 }
 0x919   :  { %v567_v55 = vpack.c.bf16 %v566_v54, %v565_v53 }
 0x91b   :  { %661 = vmatmul.msk.bf16.vlgmr.msrb.gmra.mxu0 %vm114_vm2, %v567_v55 }
 0x998   :  { %v600_v56 = vpop.f32.mrf.mxu0 }
 0x999   :  { %v601_v57 = vadd.f32 %v676_v9, %v600_v56 }
 0x99b   :  { %605 = vst [vmem:[%s971_s9] sm:$0xff] %v601_v57 }
 0x9a0   :  { %v602_v3 = vpop.f32.mrf.mxu0 }
 0x9a1   :  { %v603_v13 = vadd.f32 %v676_v9, %v602_v3 }
 0x9a3   :  { %606 = vst [vmem:[%s971_s9 + $0x8] sm:$0xff] %v603_v13 }

</bundles_post_ra>
